<compile_context>
chip_gen: v7x
topology: tpu7x:2x2x1
jax: 0.10.0
libtpu: 0.0.40
codegen_flags: <defaults>
</compile_context>

<pallas_src>
import functools
import math

import jax
import jax.numpy as jnp
from jax import lax
from jax.experimental import pallas as pl
from jax.experimental.pallas import tpu as pltpu


LANE = 128                          # TPU lane width; padded dims are multiples of this
_VMEM_LIMIT = 48 * 1024 * 1024      # fits v7x's 64 MiB physical VMEM with headroom


def _round_up(v, m):
    return ((v + m - 1) // m) * m


def _pick_tile(np_):
    # np_ is a multiple of 128; use the largest tile that divides it exactly
    for t in (512, 256, 128):
        if np_ % t == 0:
            return t
    return 128


# ----------------------------- Pallas kernels -----------------------------

def _prep_kernel(adj_t_ref, x_ref, w_ref, deg_ref, xw_ref):
    """One stream over A_T: deg[dst] = sum_src A[src,dst]  and  xw = X @ [W_aggr | w_score].

    deg is accumulated in the (resident) output block across the source-tile axis; the feature
    transform is computed once per destination-row tile (at j == 0) and rides the same pipeline.
    """
    j = pl.program_id(1)

    @pl.when(j == 0)
    def _():
        deg_ref[...] = jnp.zeros_like(deg_ref)
        xw_ref[...] = jnp.dot(x_ref[...].astype(jnp.bfloat16),
                              w_ref[...].astype(jnp.bfloat16),
                              preferred_element_type=jnp.float32)

    a = adj_t_ref[...].astype(jnp.float32)                      # (TN, TS)
    deg_ref[...] += jnp.sum(a, axis=1, keepdims=True)           # XLU reduce, not a (n,1) matmul


def _gcn_prop_kernel(adj_t_ref, src_ref, scale_ref, self_ref, out_ref, acc_ref):
    """GCN propagation: out[dst] = scale[dst] * sum_src A[src,dst] * src_vec[src] + self[dst].

    The weight-1 self loop, the D^{-1/2} normalization and the bias are all folded into
    src_vec / scale / self_term by the caller, so the kernel is a pure tiled A_T @ V stream.
    """
    j = pl.program_id(1)

    @pl.when(j == 0)
    def _():
        acc_ref[...] = jnp.zeros_like(acc_ref)

    acc_ref[...] += jnp.dot(adj_t_ref[...],                     # bf16 (TN, TS)
                            src_ref[...].astype(jnp.bfloat16),  # bf16 (TS, Fc)
                            preferred_element_type=jnp.float32)

    @pl.when(j == pl.num_programs(1) - 1)
    def _():
        out_ref[...] = scale_ref[...] * acc_ref[...] + self_ref[...]


def _pool_kernel(cand_ref, gum_ref, txt_ref, tx_ref, supx_ref,
                 assign_ref, xout_ref, acc_ref, *, inv_temp, thresh):
    """Fused assignment + pooling in the transposed (supernode, node) layout.

      sup_x     = relu(temp_x[super_nodes])               (gather done on the host)
      logits    = (log(cand) + log_sigmoid(<sup_x, temp_x>) + gumbel) / T  on candidate entries
                  (the per-node degree normalization of the module is a per-column constant and
                   cancels inside the softmax, so it is dropped)
      a         = softmax over candidate supernodes of each node, thresholded at 0.5/k
      pooled    = a @ temp_x        (accumulated across node tiles)
      x_out     = (sup_x + pooled) / 2                    (layer_agg == 'avg')
    """
    i = pl.program_id(0)

    @pl.when(i == 0)
    def _():
        acc_ref[...] = jnp.zeros_like(acc_ref)

    sup_x = jnp.maximum(supx_ref[...], 0.0)                     # relu -> (Kp, Fp)
    sim = jnp.dot(sup_x.astype(jnp.bfloat16),
                  txt_ref[...].astype(jnp.bfloat16),
                  preferred_element_type=jnp.float32)           # (Kp, TN)

    cand = cand_ref[...].astype(jnp.float32)                    # (Kp, TN)
    mask = cand > 0.0
    # stable log-sigmoid (EUP exp/log, no exp(-sim) overflow, no 1/(1+exp) divide)
    log_sig = jnp.minimum(sim, 0.0) - jnp.log(1.0 + jnp.exp(-jnp.abs(sim)))
    logits = jnp.where(
        mask,
        (jnp.log(jnp.maximum(cand, 1e-30)) + log_sig + gum_ref[...].astype(jnp.float32))
        * inv_temp,
        -1e30)

    m = jnp.max(logits, axis=0, keepdims=True)                  # per node, over supernodes
    p = jnp.where(mask, jnp.exp(logits - m), 0.0)
    denom = jnp.sum(p, axis=0, keepdims=True)
    a = p * jnp.where(denom > 0.0, pl.reciprocal(denom, approx=True), 0.0)
    a = jnp.where(a > thresh, a, 0.0)                           # remove_by_threshold(0.5/k)
    assign_ref[...] = a                                         # lane-dense (Kp, TN) store

    acc_ref[...] += jnp.dot(a.astype(jnp.bfloat16),
                            tx_ref[...].astype(jnp.bfloat16),
                            preferred_element_type=jnp.float32)  # pooled += a @ temp_x

    @pl.when(i == pl.num_programs(0) - 1)
    def _():
        xout_ref[...] = 0.5 * (sup_x + acc_ref[...])            # layer_agg == 'avg'


# ----------------------------- pallas_call wrappers -----------------------------

def _prep(adj_t, x, w_cat, tile):
    np_ = adj_t.shape[0]
    cp = x.shape[1]
    fc = w_cat.shape[1]
    return pl.pallas_call(
        _prep_kernel,
        out_shape=(jax.ShapeDtypeStruct((np_, 1), jnp.float32),     # deg (in-degree, no self loop)
                   jax.ShapeDtypeStruct((np_, fc), jnp.float32)),   # X @ [W_aggr | w_score]
        grid_spec=pltpu.PrefetchScalarGridSpec(
            num_scalar_prefetch=0,
            grid=(np_ // tile, np_ // tile),
            in_specs=[pl.BlockSpec((tile, tile), lambda i, j: (i, j)),
                      pl.BlockSpec((tile, cp), lambda i, j: (i, 0)),
                      pl.BlockSpec((cp, fc), lambda i, j: (0, 0))],
            out_specs=[pl.BlockSpec((tile, 1), lambda i, j: (i, 0)),
                       pl.BlockSpec((tile, fc), lambda i, j: (i, 0))]),
        compiler_params=pltpu.CompilerParams(
            dimension_semantics=("parallel", "arbitrary"),
            vmem_limit_bytes=_VMEM_LIMIT),
    )(adj_t, x, w_cat)


def _gcn_prop(adj_t, src_vec, scale, self_term, tile):
    np_ = adj_t.shape[0]
    fc = src_vec.shape[1]
    return pl.pallas_call(
        _gcn_prop_kernel,
        out_shape=jax.ShapeDtypeStruct((np_, fc), jnp.float32),
        grid_spec=pltpu.PrefetchScalarGridSpec(
            num_scalar_prefetch=0,
            grid=(np_ // tile, np_ // tile),
            in_specs=[pl.BlockSpec((tile, tile), lambda i, j: (i, j)),
                      pl.BlockSpec((tile, fc), lambda i, j: (j, 0)),
                      pl.BlockSpec((tile, 1), lambda i, j: (i, 0)),
                      pl.BlockSpec((tile, fc), lambda i, j: (i, 0))],
            out_specs=pl.BlockSpec((tile, fc), lambda i, j: (i, 0)),
            scratch_shapes=[pltpu.VMEM((tile, fc), jnp.float32)]),
        compiler_params=pltpu.CompilerParams(
            dimension_semantics=("parallel", "arbitrary"),
            vmem_limit_bytes=_VMEM_LIMIT),
    )(adj_t, src_vec, scale, self_term)


def _pool(cand, gumbel, temp_x_t, temp_x, sup_x, temperature, num_supernodes, tile):
    kp, np_ = cand.shape
    fc = temp_x.shape[1]
    kern = functools.partial(_pool_kernel,
                             inv_temp=1.0 / float(temperature),
                             thresh=0.5 / float(num_supernodes))
    return pl.pallas_call(
        kern,
        out_shape=(jax.ShapeDtypeStruct((kp, np_), jnp.float32),    # assign (supernode, node)
                   jax.ShapeDtypeStruct((kp, fc), jnp.float32)),    # merged supernode features
        grid_spec=pltpu.PrefetchScalarGridSpec(
            num_scalar_prefetch=0,
            grid=(np_ // tile,),
            in_specs=[pl.BlockSpec((kp, tile), lambda i: (0, i)),   # cand
                      pl.BlockSpec((kp, tile), lambda i: (0, i)),   # gumbel noise
                      pl.BlockSpec((fc, tile), lambda i: (0, i)),   # temp_x^T
                      pl.BlockSpec((tile, fc), lambda i: (i, 0)),   # temp_x
                      pl.BlockSpec((kp, fc), lambda i: (0, 0))],    # sup rows (pre-relu)
            out_specs=[pl.BlockSpec((kp, tile), lambda i: (0, i)),
                       pl.BlockSpec((kp, fc), lambda i: (0, 0))],
            scratch_shapes=[pltpu.VMEM((kp, fc), jnp.float32)]),
        compiler_params=pltpu.CompilerParams(
            dimension_semantics=("arbitrary",),                    # x_out accumulates over tiles
            vmem_limit_bytes=_VMEM_LIMIT),
    )(cand, gumbel, temp_x_t, temp_x, sup_x)


# ----------------------------- TransPool glue -----------------------------

def init_params(key, in_channels, out_channels):
    k1, k2, k3 = jax.random.split(key, 3)

    def glorot(k, fan_in, fan_out):
        limit = math.sqrt(6.0 / (fan_in + fan_out))
        return jax.random.uniform(k, (fan_in, fan_out), jnp.float32, -limit, limit)

    return dict(
        w_score=glorot(k1, in_channels, 1),
        b_score=jnp.zeros((1,), jnp.float32),
        w_aggr=glorot(k2, in_channels, out_channels),
        b_aggr=jnp.zeros((out_channels,), jnp.float32),
        # present in the module but unused in forward
        gumbel_weight=glorot(k3, in_channels, out_channels),
    )


def trans_pool_forward(params, x, adj_t, temperature, batch, gumbel_key, ratio=0.85):
    """TransPool forward on a dense transposed adjacency adj_t[dst, src] (zero diagonal).

    Returns (x_pool, out_adj_t, batch_out, super_nodes, assign) where out_adj_t is the
    supernode-level graph in the same (dst, src) convention and assign is (k, n).
    """
    n, c = x.shape
    f = params["w_aggr"].shape[1]
    k = int(math.ceil(ratio * n))

    np_ = _round_up(n, LANE)
    tile = _pick_tile(np_)
    cp = _round_up(c, LANE)
    fc = _round_up(f + 1, LANE)         # columns: [W_aggr (f) | w_score (1) | zero pad]
    kp = _round_up(k, LANE)
    fdt = jnp.float32

    # ---- pad to TPU-friendly shapes; adjacency streamed in bf16 ----
    adj_p = jnp.zeros((np_, np_), jnp.bfloat16).at[:n, :n].set(adj_t.astype(jnp.bfloat16))
    x_p = jnp.zeros((np_, cp), fdt).at[:n, :c].set(x)

    w_cat = jnp.zeros((cp, fc), fdt)
    w_cat = w_cat.at[:c, :f].set(params["w_aggr"])
    w_cat = w_cat.at[:c, f].set(params["w_score"][:, 0])
    b_cat = jnp.zeros((1, fc), fdt)
    b_cat = b_cat.at[0, :f].set(params["b_aggr"])
    b_cat = b_cat.at[0, f].set(params["b_score"][0])

    # ---- pass 1: in-degrees + fused feature transform (one adjacency stream) ----
    deg_raw, xw_cat = _prep(adj_p, x_p, w_cat, tile)            # (np,1), (np,fc)

    # ---- score GCN propagation (second adjacency stream) ----
    dinv = lax.rsqrt(deg_raw + 1.0)                             # weight-1 self loop folded in
    score_full = _gcn_prop(adj_p, dinv * xw_cat, dinv,
                           dinv * dinv * xw_cat + b_cat, tile)
    score = score_full[:n, f]                                   # column f is the score column

    # ---- topk (single graph in the batch: top ceil(ratio*N) by descending score) ----
    super_nodes = jnp.argsort(-score)[:k].astype(jnp.int32)
    batch_out = batch[super_nodes]
    is_super = jnp.zeros((np_,), fdt).at[super_nodes].set(1.0)

    # ---- node->supernode aggregation GCN on target-filtered edges (third stream) ----
    # filter_target keeps only edges whose target is a supernode; with weight-1 self loops on
    # every node its in-degree is deg*is_super + 1, so no extra pass over A is needed.
    dinv_t = lax.rsqrt(deg_raw[:, 0] * is_super + 1.0)[:, None]
    feat_mask = (jnp.arange(fc) < f).astype(fdt)[None, :]
    temp_x = _gcn_prop(adj_p,
                       dinv_t * xw_cat * feat_mask,
                       dinv_t * is_super[:, None],
                       (dinv_t * dinv_t * xw_cat + b_cat) * feat_mask,
                       tile)
    temp_x_t = temp_x.T                                         # (fc, np): cheap O(n*F) layout copy

    # ---- candidate assignment edges node -> supernode, transposed (k, n) layout ----
    # TODO(synk): cadicate_selection source unavailable; approximated as "edges whose target is
    # a supernode" (original weights) plus a unit-weight self assignment per supernode.
    # TODO(synk): these gathers (cand rows, sup rows, out_adj) stay in XLA; a scalar-prefetch
    # Pallas gather driven by super_nodes would remove the extra adjacency pass.
    sup_pad = jnp.zeros((kp,), jnp.int32).at[:k].set(super_nodes)
    row_valid = (jnp.arange(kp) < k)[:, None]
    cand = adj_p[sup_pad]                                       # (kp, np) bf16
    cand = cand.at[jnp.arange(kp), sup_pad].set(1.0)            # self assignment weight 1
    cand = jnp.where(row_valid, cand, 0).astype(jnp.bfloat16)

    sup_rows = temp_x[sup_pad]                                  # relu applied inside the kernel

    # TODO(synk): gumbel noise could be generated in-kernel with pltpu.prng_random_bits to avoid
    # this O(k*n) HBM array; kept as a (bf16) input for determinism/simplicity.
    u = jax.random.uniform(gumbel_key, (kp, np_), fdt, 1e-6, 1.0 - 1e-6)
    gumbel = (-jnp.log(-jnp.log(u))).astype(jnp.bfloat16)

    assign_full, x_out = _pool(cand, gumbel, temp_x_t, temp_x, sup_rows,
                               temperature, k, tile)

    x_pool = x_out[:k, :f]
    assign = assign_full[:k, :n]                                # (k, n): module's assign matrix

    # ---- supernode-level output graph (filter_source on supernode-target edges + remap) ----
    out_adj_t = adj_t[super_nodes][:, super_nodes].astype(fdt)  # same (dst, src) convention
    # TODO(synk): isolated_source_nodes / connect_isolated_nodes not implemented (helper source
    # unavailable); isolated supernode rows stay empty in out_adj_t.

    return x_pool, out_adj_t, batch_out, super_nodes, assign


# ----------------------------- main -----------------------------

if __name__ == "__main__":
    N, C, F = 16, 32, 32           # num_nodes, in_channels, out_channels
    RATIO = 0.85
    TEMPERATURE = 0.5

    key = jax.random.PRNGKey(0)
    kprm, kx, kmask, kw, kgum = jax.random.split(key, 5)

    params = init_params(kprm, C, F)

    x = jax.random.normal(kx, (N, C), jnp.float32)
    edge_mask = (jax.random.uniform(kmask, (N, N)) < 0.35).astype(jnp.float32)
    edge_w = jax.random.uniform(kw, (N, N), jnp.float32, 0.5, 1.5)
    # adj_t[dst, src]: dense transposed adjacency with zero diagonal (self loops removed)
    adj_t = edge_mask * edge_w * (1.0 - jnp.eye(N, dtype=jnp.float32))
    batch = jnp.zeros((N,), jnp.int32)

    outs = trans_pool_forward(params, x, adj_t, TEMPERATURE, batch, kgum, ratio=RATIO)
    outs = jax.block_until_ready(outs)

    x_pool, out_adj, batch_out, super_nodes, assign = outs
    K = int(math.ceil(RATIO * N))
    assert x_pool.shape == (K, F)
    assert out_adj.shape == (K, K)
    assert assign.shape == (K, N)
    assert batch_out.shape == (K,)
    assert super_nodes.shape == (K,)
    assert bool(jnp.all(jnp.isfinite(x_pool)))
    assert bool(jnp.all(jnp.isfinite(assign)))

    print("KERNEL_OK")
</pallas_src>

<mosaic_0001>
module attributes {stable_mosaic.version = 11 : i64} {
  func.func @_prep_kernel(%arg0: i32, %arg1: i32, %arg2: memref<128x128xbf16, #tpu.memory_space<vmem>>, %arg3: memref<128x128xf32, #tpu.memory_space<vmem>>, %arg4: memref<128x128xf32, #tpu.memory_space<vmem>>, %arg5: memref<128x1xf32, #tpu.memory_space<vmem>>, %arg6: memref<128x128xf32, #tpu.memory_space<vmem>>) attributes {dimension_semantics = [#tpu.dimension_semantics<parallel>, #tpu.dimension_semantics<arbitrary>], iteration_bounds = array<i64: 1, 1>, scalar_prefetch = 0 : i64, scratch_operands = 0 : i64, tpu.core_type = #tpu.core_type<tc>, window_params = [{transform_indices = @transform_0, window_bounds = array<i64: 128, 128>}, {transform_indices = @transform_1, window_bounds = array<i64: 128, 128>}, {pipeline_mode = #tpu.pipeline_mode<synchronous>, transform_indices = @transform_2, window_bounds = array<i64: 128, 128>}, {transform_indices = @transform_3, window_bounds = array<i64: 128, 1>}, {transform_indices = @transform_4, window_bounds = array<i64: 128, 128>}]} {
    %c0_i32 = arith.constant 0 : i32
    %0 = arith.cmpi eq, %arg1, %c0_i32 : i32
    %1 = arith.extui %0 : i1 to i32
    %c0_i32_0 = arith.constant 0 : i32
    %2 = arith.cmpi ne, %1, %c0_i32_0 : i32
    scf.if %2 {
      %cst_6 = arith.constant 0.000000e+00 : f32
      %10 = vector.broadcast %cst_6 : f32 to vector<128x1xf32>
      %c0_7 = arith.constant 0 : index
      %c0_8 = arith.constant 0 : index
      %11 = vector.load %arg5[%c0_7, %c0_8] : memref<128x1xf32, #tpu.memory_space<vmem>>, vector<128x1xf32>
      tpu.vector_store %arg5[%c0_7, %c0_8], %10 {strides = array<i32>} : memref<128x1xf32, #tpu.memory_space<vmem>>, vector<128x1xf32>,
      %c0_9 = arith.constant 0 : index
      %c0_10 = arith.constant 0 : index
      %12 = vector.load %arg3[%c0_9, %c0_10] : memref<128x128xf32, #tpu.memory_space<vmem>>, vector<128x128xf32>
      %13 = arith.truncf %12 : vector<128x128xf32> to vector<128x128xbf16>
      %c0_11 = arith.constant 0 : index
      %c0_12 = arith.constant 0 : index
      %14 = vector.load %arg4[%c0_11, %c0_12] : memref<128x128xf32, #tpu.memory_space<vmem>>, vector<128x128xf32>
      %15 = arith.truncf %14 : vector<128x128xf32> to vector<128x128xbf16>
      %cst_13 = arith.constant dense<0.000000e+00> : vector<128x128xf32>
      %16 = tpu.matmul %13, %15, %cst_13 {dimension_numbers = #tpu.dot_dimension_numbers<[1], [0], [0], [1], [0, 0, 1, 1], [], []>} : vector<128x128xbf16>, vector<128x128xbf16>, vector<128x128xf32> -> vector<128x128xf32>
      %c0_14 = arith.constant 0 : index
      %c0_15 = arith.constant 0 : index
      %17 = vector.load %arg6[%c0_14, %c0_15] : memref<128x128xf32, #tpu.memory_space<vmem>>, vector<128x128xf32>
      tpu.vector_store %arg6[%c0_14, %c0_15], %16 {strides = array<i32>} : memref<128x128xf32, #tpu.memory_space<vmem>>, vector<128x128xf32>,
    } else {
    }
    %c0 = arith.constant 0 : index
    %c0_1 = arith.constant 0 : index
    %3 = vector.load %arg2[%c0, %c0_1] : memref<128x128xbf16, #tpu.memory_space<vmem>>, vector<128x128xbf16>
    %4 = arith.extf %3 : vector<128x128xbf16> to vector<128x128xf32>
    %c0_2 = arith.constant 0 : index
    %c0_3 = arith.constant 0 : index
    %5 = vector.load %arg5[%c0_2, %c0_3] : memref<128x1xf32, #tpu.memory_space<vmem>>, vector<128x1xf32>
    %cst = arith.constant dense<0.000000e+00> : vector<128xf32>
    %6 = vector.multi_reduction <add>, %4, %cst [1] : vector<128x128xf32> to vector<128xf32>
    %7 = vector.shape_cast %6 : vector<128xf32> to vector<128x1xf32>
    %8 = arith.addf %5, %7 : vector<128x1xf32>
    %c0_4 = arith.constant 0 : index
    %c0_5 = arith.constant 0 : index
    %9 = vector.load %arg5[%c0_4, %c0_5] : memref<128x1xf32, #tpu.memory_space<vmem>>, vector<128x1xf32>
    tpu.vector_store %arg5[%c0_4, %c0_5], %8 {strides = array<i32>} : memref<128x1xf32, #tpu.memory_space<vmem>>, vector<128x1xf32>,
    return
  }
  func.func @transform_0(%arg0: i32, %arg1: i32) -> (i32, i32) {
    %c0_i32 = arith.constant 0 : i32
    return %arg0, %arg1 : i32, i32
  }
  func.func @transform_1(%arg0: i32, %arg1: i32) -> (i32, i32) {
    %c0_i32 = arith.constant 0 : i32
    %c0_i32_0 = arith.constant 0 : i32
    return %arg0, %c0_i32 : i32, i32
  }
  func.func @transform_2(%arg0: i32, %arg1: i32) -> (i32, i32) {
    %c0_i32 = arith.constant 0 : i32
    %c0_i32_0 = arith.constant 0 : i32
    %c0_i32_1 = arith.constant 0 : i32
    return %c0_i32, %c0_i32_0 : i32, i32
  }
  func.func @transform_3(%arg0: i32, %arg1: i32) -> (i32, i32) {
    %c0_i32 = arith.constant 0 : i32
    %c0_i32_0 = arith.constant 0 : i32
    return %arg0, %c0_i32 : i32, i32
  }
  func.func @transform_4(%arg0: i32, %arg1: i32) -> (i32, i32) {
    %c0_i32 = arith.constant 0 : i32
    %c0_i32_0 = arith.constant 0 : i32
    return %arg0, %c0_i32 : i32, i32
  }
}

</mosaic_0001>

<bundles_post_ra>
// kernel: tpu_custom_call.1
= control target key start
LH: loop header
LB: loop body
LE: loop exit
PB: predicated region body
PF: predicated region fallthrough
CT: control target
= control target key end

     0   :  { %10 = vsyncpa [#allocation3], 0  ;;  %s849_s0 = inlined_call_operand.hbm [shape: bf16[128,128], index: 0, kind: input, shape index: {}]   ;;  %s850_s1 = inlined_call_operand.hbm [shape: f32[128,128], index: 1, kind: input, shape index: {}]   ;;  %s851_s2 = inlined_call_operand.hbm [shape: f32[128,128], index: 2, kind: input, shape index: {}]   ;;  %s852_s3 = inlined_call_operand.vmem [shape: f32[128,1], index: 3, kind: output, shape index: {0}]   ;;  %s853_s4 = inlined_call_operand.hbm [shape: f32[128,128], index: 4, kind: output, shape index: {1}]  }
   0x1   :  { %11 = vsyncpa [#allocation6], 0 }
   0x2   :  { %12 = vsyncpa [#allocation4], 0  ;;  %s582_s15 = smov [#allocation5]   ;;  %s488_s19 = scalar_lea.hbm %s850_s1, 2048 }
   0x3   :  { %s30_s16 = sshll.u32 %s582_s15, 4  ;;  %p489_p0 = scmp.ne.s32.totalorder %s850_s1, %s488_s19  ;;  %s31_s16 = int_to_ptr.vmem [resolvable:$true] %s30_s16 }
   0x4   :  { %p492_p1 = scmp.lt.u32.totalorder %s488_s19, %s850_s1 }
   0x6   :  { %p494_p2 = pnand %p492_p1, %p489_p0 }
   0x8   :  { %497 = shalt.err (!%p494_p2)
}
   0x9   :  { %s498_s24 = scalar_lea.vmem %s31_s16, 2048  ;;  %p503_p4 = scmp.lt.s32.totalorder %s31_s16, %s31_s16 }
   0xa   :  { %p499_p3 = scmp.ne.s32.totalorder %s31_s16, %s498_s24  ;;  %p504_p5 = scmp.lt.s32.totalorder %s498_s24, %s498_s24 }
   0xc   :  { %p505_p6 = por %p504_p5, %p503_p4 }
   0xe   :  { %p506_p7 = pnand %p505_p6, %p499_p3 }
  0x10   :  { %509 = shalt.err (!%p506_p7)
}
  0x11   :  { %s583_s25 = smov 128   ;;  %s584_s26 = smov 8  }
  0x12   :  { %36 = dma.hbm_to_vmem [thread:$0]  %s850_s1, 2048, %s31_s16, [#allocation6], %s583_s25, %s583_s25, %s584_s26  }
  0x13   :  { %s585_s29 = smov [#allocation2]   ;;  %s510_s7 = scalar_lea.hbm %s849_s0, 1024 }
  0x14   :  { %s18_s30 = sshll.u32 %s585_s29, 4  ;;  %p511_p8 = scmp.ne.s32.totalorder %s849_s0, %s510_s7  ;;  %s19_s30 = int_to_ptr.vmem [resolvable:$true] %s18_s30 }
  0x15   :  { %p514_p9 = scmp.lt.u32.totalorder %s510_s7, %s849_s0 }
  0x17   :  { %p516_p10 = pnand %p514_p9, %p511_p8 }
  0x19   :  { %519 = shalt.err (!%p516_p10)
}
  0x1a   :  { %s520_s12 = scalar_lea.vmem %s19_s30, 1024  ;;  %p525_p12 = scmp.lt.s32.totalorder %s19_s30, %s19_s30 }
  0x1b   :  { %p521_p11 = scmp.ne.s32.totalorder %s19_s30, %s520_s12  ;;  %p526_p13 = scmp.lt.s32.totalorder %s520_s12, %s520_s12 }
  0x1d   :  { %p527_p0 = por %p526_p13, %p525_p12 }
  0x1f   :  { %p528_p1 = pnand %p527_p0, %p521_p11 }
  0x21   :  { %531 = shalt.err (!%p528_p1)
}
  0x22   :  { %s586_s1 = smov 64   ;;  %s587_s13 = smov 4  }
  0x23   :  { %24 = dma.hbm_to_vmem [thread:$0]  %s849_s0, 1024, %s19_s30, [#allocation3], %s586_s1, %s586_s1, %s587_s13  }
  0x24   :  { %s588_s16 = smov [#allocation7]   ;;  %s532_s20 = scalar_lea.hbm %s851_s2, 2048 }
  0x25   :  { %s42_s17 = sshll.u32 %s588_s16, 4  ;;  %p533_p2 = scmp.ne.s32.totalorder %s851_s2, %s532_s20  ;;  %s43_s17 = int_to_ptr.vmem [resolvable:$true] %s42_s17 }
  0x26   :  { %p536_p3 = scmp.lt.u32.totalorder %s532_s20, %s851_s2 }
  0x28   :  { %p538_p4 = pnand %p536_p3, %p533_p2 }
  0x2a   :  { %541 = shalt.err (!%p538_p4)
}
  0x2b   :  { %s542_s27 = scalar_lea.vmem %s43_s17, 2048  ;;  %p547_p6 = scmp.lt.s32.totalorder %s43_s17, %s43_s17 }
  0x2c   :  { %p543_p5 = scmp.ne.s32.totalorder %s43_s17, %s542_s27  ;;  %p548_p7 = scmp.lt.s32.totalorder %s542_s27, %s542_s27 }
  0x2e   :  { %p549_p8 = por %p548_p7, %p547_p6 }
  0x30   :  { %p550_p9 = pnand %p549_p8, %p543_p5 }
  0x32   :  { %553 = shalt.err (!%p550_p9)
}
  0x33   :  { %48 = dma.hbm_to_vmem [thread:$0]  %s851_s2, 2048, %s43_s17, [#allocation6], %s583_s25, %s583_s25, %s584_s26  }
  0x34   :  { %576 = dma.done.wait [#allocation3], 1024  }
  0x35   :  { %577 = vsyncadd [#allocation3], 4294966272 }
  0x36   :  { %578 = dma.done.wait [#allocation6], 4096  }
  0x37   :  { %579 = vsyncadd [#allocation6], 4294963200  ;;  %vm63_vm0 = vcmask 7168   ;;  %v589_v0 = vmov 0.0   ;;  %v104_v1 = vld [vmem:[#allocation7] sm:$0xff]  ;;  %v105_v2 = vld [vmem:[#allocation7 + $0x8] sm:$0xff] }
  0x38   :  { %66 = vst.msk [vmem:[%s852_s3 + $0x10] sm:$0xff] %vm63_vm0, %v589_v0  ;;  %64 = vst.msk [vmem:[%s852_s3] sm:$0xff] %vm63_vm0, %v589_v0  ;;  %v106_v3 = vld [vmem:[#allocation7 + $0x10] sm:$0xff]  ;;  %v120_v4 = vpack.c.bf16 %v105_v2, %v104_v1  ;;  %v107_v5 = vld [vmem:[#allocation7 + $0x18] sm:$0xff]  ;;  %s590_s16 = smov [#allocation8]  }
  0x39   :  { %65 = vst.msk [vmem:[%s852_s3 + $0x8] sm:$0xff] %vm63_vm0, %v589_v0  ;;  %67 = vst.msk [vmem:[%s852_s3 + $0x18] sm:$0xff] %vm63_vm0, %v589_v0  ;;  %v121_v6 = vpack.c.bf16 %v107_v5, %v106_v3  ;;  %v108_v7 = vld [vmem:[#allocation7 + $0x20] sm:$0xff]  ;;  %v109_v8 = vld [vmem:[#allocation7 + $0x28] sm:$0xff]  ;;  %s361_s17 = sshll.u32 %s590_s16, 4  ;;  %s362_s17 = int_to_ptr.vmem [resolvable:$true] %s361_s17 }
  0x3a   :  { %68 = vst.msk [vmem:[%s852_s3 + $0x20] sm:$0xff] %vm63_vm0, %v589_v0  ;;  %69 = vst.msk [vmem:[%s852_s3 + $0x28] sm:$0xff] %vm63_vm0, %v589_v0  ;;  %431 = vmatprep.subr.bf16.mxu0 %v120_v4  ;;  %463 = vmatprep.subr.bf16.mxu1 %v120_v4  ;;  %v122_v9 = vpack.c.bf16 %v109_v8, %v108_v7  ;;  %v110_v10 = vld [vmem:[#allocation7 + $0x30] sm:$0xff]  ;;  %v80_v11 = vld [vmem:[#allocation5] sm:$0xff]  ;;  %p559_p11 = scmp.lt.s32.totalorder %s362_s17, %s362_s17 }
  0x3b   :  { %70 = vst.msk [vmem:[%s852_s3 + $0x30] sm:$0xff] %vm63_vm0, %v589_v0  ;;  %71 = vst.msk [vmem:[%s852_s3 + $0x38] sm:$0xff] %vm63_vm0, %v589_v0  ;;  %432 = vmatpush3.bf16.msra.mxu0 %v120_v4  ;;  %471 = vmatpush3.bf16.msra.mxu1 %v120_v4  ;;  %v81_v12 = vld [vmem:[#allocation5 + $0x8] sm:$0xff]  ;;  %v111_v13 = vld [vmem:[#allocation7 + $0x38] sm:$0xff] }
  0x3c   :  { %72 = vst.msk [vmem:[%s852_s3 + $0x40] sm:$0xff] %vm63_vm0, %v589_v0  ;;  %73 = vst.msk [vmem:[%s852_s3 + $0x48] sm:$0xff] %vm63_vm0, %v589_v0  ;;  %433 = vmatprep.subr.bf16.mxu0 %v121_v6  ;;  %464 = vmatprep.subr.bf16.mxu1 %v121_v6  ;;  %v96_v14 = vpack.c.bf16 %v81_v12, %v80_v11  ;;  %v88_v15 = vld [vmem:[#allocation5 + $0x40] sm:$0xff]  ;;  %v89_v16 = vld [vmem:[#allocation5 + $0x48] sm:$0xff]  ;;  %v123_v18 = vpack.c.bf16 %v111_v13, %v110_v10 }
  0x3d   :  { %74 = vst.msk [vmem:[%s852_s3 + $0x50] sm:$0xff] %vm63_vm0, %v589_v0  ;;  %75 = vst.msk [vmem:[%s852_s3 + $0x58] sm:$0xff] %vm63_vm0, %v589_v0  ;;  %v100_v17 = vpack.c.bf16 %v89_v16, %v88_v15  ;;  %v112_v19 = vld [vmem:[#allocation7 + $0x40] sm:$0xff]  ;;  %v113_v20 = vld [vmem:[#allocation7 + $0x48] sm:$0xff] }
  0x3e   :  { %76 = vst.msk [vmem:[%s852_s3 + $0x60] sm:$0xff] %vm63_vm0, %v589_v0  ;;  %77 = vst.msk [vmem:[%s852_s3 + $0x68] sm:$0xff] %vm63_vm0, %v589_v0  ;;  %447 = vmatprep.mubr.bf16.mxu0 %v96_v14  ;;  %v408_v21 = vld [vmem:[#allocation2 + $0x8] sm:$0xff]   ;;  %v377_v23 = vld [vmem:[#allocation2] sm:$0xff]   ;;  %v124_v25 = vpack.c.bf16 %v113_v20, %v112_v19 }
  0x3f   :  { %78 = vst.msk [vmem:[%s852_s3 + $0x70] sm:$0xff] %vm63_vm0, %v589_v0  ;;  %79 = vst.msk [vmem:[%s852_s3 + $0x78] sm:$0xff] %vm63_vm0, %v589_v0  ;;  %434 = vmatpush3.bf16.msra.mxu0 %v121_v6  ;;  %472 = vmatpush3.bf16.msra.mxu1 %v121_v6  ;;  %v382_v22 = vunpack.c.l.bf16 %v408_v21  ;;  %v378_v24 = vunpack.c.l.bf16 %v377_v23  ;;  %v114_v26 = vld [vmem:[#allocation7 + $0x50] sm:$0xff]  ;;  %v115_v27 = vld [vmem:[#allocation7 + $0x58] sm:$0xff]  ;;  %v383_v28 = vunpack.c.h.bf16 %v408_v21  ;;  %v379_v29 = vunpack.c.h.bf16 %v377_v23 }
  0x40   :  { %435 = vmatprep.subr.bf16.mxu0 %v122_v9  ;;  %465 = vmatprep.subr.bf16.mxu1 %v122_v9  ;;  %v409_v30 = vld [vmem:[#allocation2 + $0x10] sm:$0xff]   ;;  %v125_v31 = vpack.c.bf16 %v115_v27, %v114_v26  ;;  %v116_v32 = vld [vmem:[#allocation7 + $0x60] sm:$0xff]  ;;  %v117_v33 = vld [vmem:[#allocation7 + $0x68] sm:$0xff] }
  0x41   :  { %455 = vmatprep.mubr.bf16.mxu1 %v100_v17  ;;  %293 = vadd.xlane.f32.xlu1 %v382_v22  ;;  %v387_v34 = vunpack.c.h.bf16 %v409_v30  ;;  %v386_v35 = vunpack.c.l.bf16 %v409_v30  ;;  %v410_v36 = vld [vmem:[#allocation2 + $0x18] sm:$0xff]   ;;  %v126_v37 = vpack.c.bf16 %v117_v33, %v116_v32  ;;  %v118_v38 = vld [vmem:[#allocation7 + $0x70] sm:$0xff]  ;;  %v411_v42 = vld [vmem:[#allocation2 + $0x20] sm:$0xff]  }
  0x42   :  { %289 = vadd.xlane.f32.xlu0 %v378_v24  ;;  %v119_v39 = vld [vmem:[#allocation7 + $0x78] sm:$0xff]  ;;  %v391_v40 = vunpack.c.h.bf16 %v410_v36  ;;  %v390_v41 = vunpack.c.l.bf16 %v410_v36  ;;  %v395_v44 = vunpack.c.h.bf16 %v411_v42  ;;  %v394_v45 = vunpack.c.l.bf16 %v411_v42  ;;  %v82_v46 = vld [vmem:[#allocation5 + $0x10] sm:$0xff]  ;;  %v412_v48 = vld [vmem:[#allocation2 + $0x28] sm:$0xff]  }
  0x43   :  { %436 = vmatpush3.bf16.msra.mxu0 %v122_v9  ;;  %473 = vmatpush3.bf16.msra.mxu1 %v122_v9  ;;  %v127_v43 = vpack.c.bf16 %v119_v39, %v118_v38  ;;  %v83_v47 = vld [vmem:[#allocation5 + $0x18] sm:$0xff]  ;;  %v90_v49 = vld [vmem:[#allocation5 + $0x50] sm:$0xff]  ;;  %v84_v51 = vld [vmem:[#allocation5 + $0x20] sm:$0xff]  ;;  %v399_v55 = vunpack.c.h.bf16 %v412_v48  ;;  %v398_v56 = vunpack.c.l.bf16 %v412_v48 }
  0x44   :  { %437 = vmatprep.subr.bf16.mxu0 %v123_v18  ;;  %466 = vmatprep.subr.bf16.mxu1 %v123_v18  ;;  %v91_v50 = vld [vmem:[#allocation5 + $0x58] sm:$0xff]  ;;  %v85_v52 = vld [vmem:[#allocation5 + $0x28] sm:$0xff]  ;;  %v92_v53 = vld [vmem:[#allocation5 + $0x60] sm:$0xff]  ;;  %v97_v57 = vpack.c.bf16 %v83_v47, %v82_v46 }
  0x45   :  { %295 = vadd.xlane.f32.xlu1 %v383_v28  ;;  %v93_v54 = vld [vmem:[#allocation5 + $0x68] sm:$0xff]  ;;  %v101_v58 = vpack.c.bf16 %v91_v50, %v90_v49  ;;  %v413_v59 = vld [vmem:[#allocation2 + $0x30] sm:$0xff]   ;;  %v98_v60 = vpack.c.bf16 %v85_v52, %v84_v51  ;;  %v414_v1 = vld [vmem:[#allocation2 + $0x38] sm:$0xff]  }
  0x46   :  { %291 = vadd.xlane.f32.xlu0 %v379_v29  ;;  %v102_v61 = vpack.c.bf16 %v93_v54, %v92_v53  ;;  %v403_v62 = vunpack.c.h.bf16 %v413_v59  ;;  %v402_v63 = vunpack.c.l.bf16 %v413_v59  ;;  %v86_v0 = vld [vmem:[#allocation5 + $0x30] sm:$0xff]  ;;  %v87_v2 = vld [vmem:[#allocation5 + $0x38] sm:$0xff]  ;;  %v407_v5 = vunpack.c.h.bf16 %v414_v1  ;;  %v273_v10 = vld [vmem:[%s852_s3] sm:$0xff] }
  0x47   :  { %438 = vmatpush3.bf16.msra.mxu0 %v123_v18  ;;  %474 = vmatpush3.bf16.msra.mxu1 %v123_v18  ;;  %v94_v3 = vld [vmem:[#allocation5 + $0x70] sm:$0xff]  ;;  %v95_v4 = vld [vmem:[#allocation5 + $0x78] sm:$0xff]  ;;  %v406_v6 = vunpack.c.l.bf16 %v414_v1  ;;  %v99_v7 = vpack.c.bf16 %v87_v2, %v86_v0  ;;  %v274_v16 = vld [vmem:[%s852_s3 + $0x8] sm:$0xff] }
  0x48   :  { %439 = vmatprep.subr.bf16.mxu0 %v124_v25  ;;  %467 = vmatprep.subr.bf16.mxu1 %v124_v25  ;;  %v103_v8 = vpack.c.bf16 %v95_v4, %v94_v3  ;;  %v275_v9 = vld [vmem:[%s852_s3 + $0x10] sm:$0xff]  ;;  %v276_v15 = vld [vmem:[%s852_s3 + $0x18] sm:$0xff]  ;;  %v278_v21 = vld [vmem:[%s852_s3 + $0x28] sm:$0xff] }
  0x49   :  { %299 = vadd.xlane.f32.xlu1 %v387_v34  ;;  %v277_v22 = vld [vmem:[%s852_s3 + $0x20] sm:$0xff]  ;;  %v280_v27 = vld [vmem:[%s852_s3 + $0x38] sm:$0xff]  ;;  %v279_v28 = vld [vmem:[%s852_s3 + $0x30] sm:$0xff] }
  0x4a   :  { %297 = vadd.xlane.f32.xlu0 %v386_v35  ;;  %v282_v33 = vld [vmem:[%s852_s3 + $0x48] sm:$0xff]  ;;  %v281_v34 = vld [vmem:[%s852_s3 + $0x40] sm:$0xff]  ;;  %v284_v39 = vld [vmem:[%s852_s3 + $0x58] sm:$0xff] }
  0x4b   :  { %440 = vmatpush3.bf16.msra.mxu0 %v124_v25  ;;  %475 = vmatpush3.bf16.msra.mxu1 %v124_v25  ;;  %v285_v46 = vld [vmem:[%s852_s3 + $0x60] sm:$0xff]  ;;  %v288_v51 = vld [vmem:[%s852_s3 + $0x78] sm:$0xff]  ;;  %v287_v52 = vld [vmem:[%s852_s3 + $0x70] sm:$0xff] }
  0x4c   :  { %441 = vmatprep.subr.bf16.mxu0 %v125_v31  ;;  %468 = vmatprep.subr.bf16.mxu1 %v125_v31 }
  0x4d   :  { %303 = vadd.xlane.f32.xlu1 %v391_v40  ;;  %v283_v40 = vld [vmem:[%s852_s3 + $0x50] sm:$0xff] }
  0x4e   :  { %301 = vadd.xlane.f32.xlu0 %v390_v41 }
  0x4f   :  { %442 = vmatpush3.bf16.msra.mxu0 %v125_v31  ;;  %476 = vmatpush3.bf16.msra.mxu1 %v125_v31 }
  0x50   :  { %443 = vmatprep.subr.bf16.mxu0 %v126_v37  ;;  %469 = vmatprep.subr.bf16.mxu1 %v126_v37 }
  0x51   :  { %307 = vadd.xlane.f32.xlu1 %v395_v44 }
  0x52   :  { %305 = vadd.xlane.f32.xlu0 %v394_v45  ;;  %v286_v45 = vld [vmem:[%s852_s3 + $0x68] sm:$0xff] }
  0x53   :  { %444 = vmatpush3.bf16.msra.mxu0 %v126_v37  ;;  %477 = vmatpush3.bf16.msra.mxu1 %v126_v37 }
  0x54   :  { %445 = vmatprep.subr.bf16.mxu0 %v127_v43  ;;  %470 = vmatprep.subr.bf16.mxu1 %v127_v43 }
  0x55   :  { %311 = vadd.xlane.f32.xlu1 %v399_v55 }
  0x56   :  { %309 = vadd.xlane.f32.xlu0 %v398_v56 }
  0x57   :  { %446 = vmatpush3.bf16.msra.mxu0 %v127_v43  ;;  %478 = vmatpush3.bf16.msra.mxu1 %v127_v43 }
  0x59   :  { %315 = vadd.xlane.f32.xlu1 %v403_v62 }
  0x5a   :  { %448 = vmatmul.mubr.bf16.vlgmr.msra.gmra.mrb[0].mxu0 %v97_v57  ;;  %456 = vmatmul.mubr.bf16.vlgmr.msra.gmra.mrb[0].mxu1 %v101_v58 }
  0x5b   :  { %451 = vmatprep.mubr.bf16.mxu0 %v98_v60  ;;  %459 = vmatprep.mubr.bf16.mxu1 %v102_v61 }
  0x5c   :  { %313 = vadd.xlane.f32.xlu0 %v402_v63 }
  0x5d   :  { %319 = vadd.xlane.f32.xlu1 %v407_v5 }
  0x60   :  { %317 = vadd.xlane.f32.xlu0 %v406_v6 }
  0x62   :  { %452 = vmatmul.mubr.bf16.gmra.mrb[4].mxu0 %v99_v7  ;;  %460 = vmatmul.mubr.bf16.gmra.mrb[4].mxu1 %v103_v8 }
  0xce   :  { %v294_v11 = vpop.xlane.xlu1 %293 }
  0xcf   :  { %v290_v12 = vpop.xlane.xlu0 %289  ;;  %v323_v13 = vadd.f32 %v294_v11, %v275_v9 }
  0xd0   :  { %v321_v14 = vadd.f32 %v290_v12, %v273_v10 }
  0xd1   :  { %340 = vst.msk [vmem:[%s852_s3 + $0x10] sm:$0xff] %vm63_vm0, %v323_v13 }
  0xd2   :  { %338 = vst.msk [vmem:[%s852_s3] sm:$0xff] %vm63_vm0, %v321_v14  ;;  %v296_v17 = vpop.xlane.xlu1 %295 }
  0xd3   :  { %v292_v18 = vpop.xlane.xlu0 %291  ;;  %v324_v19 = vadd.f32 %v296_v17, %v276_v15 }
  0xd4   :  { %v322_v20 = vadd.f32 %v292_v18, %v274_v16 }
  0xd5   :  { %341 = vst.msk [vmem:[%s852_s3 + $0x18] sm:$0xff] %vm63_vm0, %v324_v19 }
  0xd6   :  { %339 = vst.msk [vmem:[%s852_s3 + $0x8] sm:$0xff] %vm63_vm0, %v322_v20  ;;  %v300_v23 = vpop.xlane.xlu1 %299 }
  0xd7   :  { %v298_v24 = vpop.xlane.xlu0 %297  ;;  %v326_v25 = vadd.f32 %v300_v23, %v278_v21 }
  0xd8   :  { %v325_v26 = vadd.f32 %v298_v24, %v277_v22 }
  0xd9   :  { %343 = vst.msk [vmem:[%s852_s3 + $0x28] sm:$0xff] %vm63_vm0, %v326_v25 }
  0xda   :  { %342 = vst.msk [vmem:[%s852_s3 + $0x20] sm:$0xff] %vm63_vm0, %v325_v26  ;;  %v304_v29 = vpop.xlane.xlu1 %303 }
  0xdb   :  { %v302_v30 = vpop.xlane.xlu0 %301  ;;  %v328_v31 = vadd.f32 %v304_v29, %v280_v27 }
  0xdc   :  { %v327_v32 = vadd.f32 %v302_v30, %v279_v28 }
  0xdd   :  { %345 = vst.msk [vmem:[%s852_s3 + $0x38] sm:$0xff] %vm63_vm0, %v328_v31 }
  0xde   :  { %344 = vst.msk [vmem:[%s852_s3 + $0x30] sm:$0xff] %vm63_vm0, %v327_v32  ;;  %v308_v35 = vpop.xlane.xlu1 %307 }
  0xdf   :  { %v306_v36 = vpop.xlane.xlu0 %305  ;;  %v330_v37 = vadd.f32 %v308_v35, %v282_v33 }
  0xe0   :  { %v329_v38 = vadd.f32 %v306_v36, %v281_v34 }
  0xe1   :  { %347 = vst.msk [vmem:[%s852_s3 + $0x48] sm:$0xff] %vm63_vm0, %v330_v37 }
  0xe2   :  { %346 = vst.msk [vmem:[%s852_s3 + $0x40] sm:$0xff] %vm63_vm0, %v329_v38  ;;  %v312_v41 = vpop.xlane.xlu1 %311 }
  0xe3   :  { %v310_v42 = vpop.xlane.xlu0 %309  ;;  %v332_v43 = vadd.f32 %v312_v41, %v284_v39 }
  0xe4   :  { %v331_v44 = vadd.f32 %v310_v42, %v283_v40 }
  0xe5   :  { %349 = vst.msk [vmem:[%s852_s3 + $0x58] sm:$0xff] %vm63_vm0, %v332_v43 }
  0xe6   :  { %348 = vst.msk [vmem:[%s852_s3 + $0x50] sm:$0xff] %vm63_vm0, %v331_v44  ;;  %v316_v47 = vpop.xlane.xlu1 %315 }
  0xe7   :  { %v334_v49 = vadd.f32 %v316_v47, %v286_v45 }
  0xe9   :  { %v314_v48 = vpop.xlane.xlu0 %313  ;;  %351 = vst.msk [vmem:[%s852_s3 + $0x68] sm:$0xff] %vm63_vm0, %v334_v49 }
  0xea   :  { %v333_v50 = vadd.f32 %v314_v48, %v285_v46  ;;  %v320_v53 = vpop.xlane.xlu1 %319 }
  0xeb   :  { %v336_v55 = vadd.f32 %v320_v53, %v288_v51 }
  0xec   :  { %350 = vst.msk [vmem:[%s852_s3 + $0x60] sm:$0xff] %vm63_vm0, %v333_v50 }
  0xed   :  { %v318_v54 = vpop.xlane.xlu0 %317  ;;  %353 = vst.msk [vmem:[%s852_s3 + $0x78] sm:$0xff] %vm63_vm0, %v336_v55 }
  0xee   :  { %v335_v56 = vadd.f32 %v318_v54, %v287_v52 }
  0xf0   :  { %352 = vst.msk [vmem:[%s852_s3 + $0x70] sm:$0xff] %vm63_vm0, %v335_v56  ;;  %s554_s3 = scalar_lea.vmem %s362_s17, 2048 }
  0xf1   :  { %p555_p10 = scmp.ne.s32.totalorder %s362_s17, %s554_s3  ;;  %p560_p12 = scmp.lt.s32.totalorder %s554_s3, %s554_s3 }
  0xf3   :  { %p561_p13 = por %p560_p12, %p559_p11 }
  0xf5   :  { %p562_p0 = pnand %p561_p13, %p555_p10 }
 0x12d   :  { %v449_v57 = vpop.f32.mrb[0].mxu0  ;;  %v457_v58 = vpop.f32.mrb[0].mxu1 }
 0x12e   :  { %227 = vst [vmem:[#allocation8 + $0x10] sm:$0xff] %v449_v57  ;;  %235 = vst [vmem:[#allocation8 + $0x50] sm:$0xff] %v457_v58  ;;  %v162_v59 = vpop.f32.mrb[1].mxu0  ;;  %v194_v60 = vpop.f32.mrb[1].mxu1 }
 0x12f   :  { %225 = vst [vmem:[#allocation8] sm:$0xff] %v162_v59  ;;  %233 = vst [vmem:[#allocation8 + $0x40] sm:$0xff] %v194_v60  ;;  %v450_v61 = vpop.f32.mrb[2].mxu0  ;;  %v458_v62 = vpop.f32.mrb[2].mxu1 }
 0x130   :  { %228 = vst [vmem:[#allocation8 + $0x18] sm:$0xff] %v450_v61  ;;  %236 = vst [vmem:[#allocation8 + $0x58] sm:$0xff] %v458_v62  ;;  %v165_v63 = vpop.f32.mrb[3].mxu0  ;;  %v197_v0 = vpop.f32.mrb[3].mxu1 }
 0x131   :  { %226 = vst [vmem:[#allocation8 + $0x8] sm:$0xff] %v165_v63  ;;  %234 = vst [vmem:[#allocation8 + $0x48] sm:$0xff] %v197_v0 }
 0x135   :  { %v453_v1 = vpop.f32.mrb[4].mxu0  ;;  %v461_v2 = vpop.f32.mrb[4].mxu1 }
 0x136   :  { %231 = vst [vmem:[#allocation8 + $0x30] sm:$0xff] %v453_v1  ;;  %239 = vst [vmem:[#allocation8 + $0x70] sm:$0xff] %v461_v2  ;;  %v178_v3 = vpop.f32.mrb[5].mxu0  ;;  %v210_v4 = vpop.f32.mrb[5].mxu1 }
 0x137   :  { %229 = vst [vmem:[#allocation8 + $0x20] sm:$0xff] %v178_v3  ;;  %237 = vst [vmem:[#allocation8 + $0x60] sm:$0xff] %v210_v4  ;;  %v454_v5 = vpop.f32.mrb[6].mxu0  ;;  %v462_v6 = vpop.f32.mrb[6].mxu1 }
 0x138   :  { %232 = vst [vmem:[#allocation8 + $0x38] sm:$0xff] %v454_v5  ;;  %240 = vst [vmem:[#allocation8 + $0x78] sm:$0xff] %v462_v6  ;;  %v181_v7 = vpop.f32.mrb[7].mxu0  ;;  %v213_v8 = vpop.f32.mrb[7].mxu1 }
 0x139   :  { %230 = vst [vmem:[#allocation8 + $0x28] sm:$0xff] %v181_v7  ;;  %238 = vst [vmem:[#allocation8 + $0x68] sm:$0xff] %v213_v8 }
 0x13a   :  { %565 = shalt.err (!%p562_p0)
}
 0x13b   :  { %s566_s20 = scalar_lea.hbm %s853_s4, 2048 }
 0x13c   :  { %p567_p1 = scmp.ne.s32.totalorder %s853_s4, %s566_s20  ;;  %p570_p2 = scmp.lt.u32.totalorder %s566_s20, %s853_s4 }
 0x13e   :  { %p572_p3 = pnand %p570_p2, %p567_p1 }
 0x140   :  { %575 = shalt.err (!%p572_p3)
}
 0x141   :  { %367 = dma.vmem_to_hbm [thread:$0]  %s362_s17, 2048, %s853_s4, [#allocation4], %s583_s25, %s583_s25, %s584_s26  }
 0x142   :  { %580 = dma.done.wait [#allocation4], 2048  }
 0x143   :  { %581 = vsyncadd [#allocation4], 4294965248 }
 0x144   :  { %373 = vsyncpa [#allocation3], 1 }
 0x145   :  { %374 = vsyncpa [#allocation6], 1 }
 0x146   :  { %375 = vsyncpa [#allocation4], 1 }

</bundles_post_ra>
